<compile_context>
chip_gen: v7x
topology: tpu7x:2x2x1
jax: 0.10.0
libtpu: 0.0.40
codegen_flags: <defaults>
</compile_context>

<pallas_src>
import functools

import jax
import jax.numpy as jnp
from jax.experimental import pallas as pl
from jax.experimental.pallas import tpu as pltpu


def _round_up(x, m):
    return ((x + m - 1) // m) * m


def _dqn_kernel(x_ref, w_ref, b_ref, out_ref, *, in_dims, fc1, fc2, n_actions, r1, r2):
    # f32 state tile read from HBM, cast to bf16 in-vreg (no separate wrapper pass).
    x = x_ref[...].astype(jnp.bfloat16)

    # Static slices of the packed, VMEM-resident parameter blobs.
    w1 = w_ref[0:in_dims, 0:fc1]                       # (in_dims, fc1)  bf16
    w2 = w_ref[r1:r1 + fc1, 0:fc2]                     # (fc1, fc2)      bf16
    w3 = w_ref[r1 + r2:r1 + r2 + fc2, 0:n_actions]     # (fc2, n_actions) bf16
    b1 = b_ref[0:1, 0:fc1]                             # (1, fc1)  f32
    b2 = b_ref[1:2, 0:fc2]                             # (1, fc2)  f32
    b3 = b_ref[2:3, 0:n_actions]                       # (1, n_actions) f32

    # fc1 + relu (bf16 operands on the MXU, f32 accumulate / bias / ReLU)
    h1 = jnp.maximum(jnp.dot(x, w1, preferred_element_type=jnp.float32) + b1, 0.0)
    h1 = h1.astype(jnp.bfloat16)
    # fc2 + relu
    h2 = jnp.maximum(jnp.dot(h1, w2, preferred_element_type=jnp.float32) + b2, 0.0)
    h2 = h2.astype(jnp.bfloat16)
    # fc3 (no activation) -> action values
    out_ref[...] = jnp.dot(h2, w3, preferred_element_type=jnp.float32) + b3
    # TODO(synk): optional — emit bf16 Q-values or fuse the act() argmax to a (tb, 1)
    # int32 output to trim writeback / remove a downstream kernel.


def pack_params(params):
    """One-time packing: weights -> one bf16 blob, biases -> one f32 blob.

    Collapses 7 per-call operands (and 3 per-call bf16 casts) into 3 operands total;
    weight row-groups are 8-aligned so in-kernel slices stay sublane-aligned.
    """
    w1, w2, w3 = params["w1"], params["w2"], params["w3"]
    b1, b2, b3 = params["b1"], params["b2"], params["b3"]
    in_dims, fc1 = w1.shape
    fc2 = w2.shape[1]
    n_actions = w3.shape[1]
    r1, r2, r3 = _round_up(in_dims, 8), _round_up(fc1, 8), _round_up(fc2, 8)
    lanes = max(fc1, fc2, n_actions)

    wblob = jnp.zeros((r1 + r2 + r3, lanes), jnp.bfloat16)
    wblob = wblob.at[0:in_dims, 0:fc1].set(w1.astype(jnp.bfloat16))
    wblob = wblob.at[r1:r1 + fc1, 0:fc2].set(w2.astype(jnp.bfloat16))
    wblob = wblob.at[r1 + r2:r1 + r2 + fc2, 0:n_actions].set(w3.astype(jnp.bfloat16))

    bblob = jnp.zeros((3, lanes), jnp.float32)
    bblob = bblob.at[0, 0:fc1].set(b1.reshape(-1))
    bblob = bblob.at[1, 0:fc2].set(b2.reshape(-1))
    bblob = bblob.at[2, 0:n_actions].set(b3.reshape(-1))

    dims = dict(in_dims=in_dims, fc1=fc1, fc2=fc2, n_actions=n_actions, r1=r1, r2=r2)
    return {"w": wblob, "b": bblob, "dims": dims}


def deep_q_network(state, packed, *, tile_b=8192):
    """Forward pass of DeepQNetwork as a batch-tiled fused Pallas kernel.

    state:  (B, input_dims) float32
    packed: result of pack_params(params)
    returns (B, n_actions) float32
    """
    B, in_dims = state.shape
    d = packed["dims"]
    assert in_dims == d["in_dims"], "state feature dim mismatch"
    fc1, fc2, n_actions = d["fc1"], d["fc2"], d["n_actions"]
    wblob, bblob = packed["w"], packed["b"]

    # Batch tile: multiple of 8 sublanes, shrunk to the (8-rounded) batch when the whole
    # batch fits in one block. No padding of the input: the ragged last block (if any)
    # is masked by Pallas (OOB reads produce garbage rows, OOB writes are dropped).
    tb = min(_round_up(tile_b, 8), _round_up(B, 8))
    grid = (pl.cdiv(B, tb),)

    # Pipelined state/out VMEM buffers lane-pad to 128 (~512 B/row/buffer each); size the
    # scoped-VMEM limit explicitly — v5e's default is only 16 MiB.
    vmem_limit = int(min(max(12 * tb * 512, 32 * 1024 * 1024), 100 * 1024 * 1024))

    kernel = functools.partial(
        _dqn_kernel,
        in_dims=in_dims, fc1=fc1, fc2=fc2, n_actions=n_actions,
        r1=d["r1"], r2=d["r2"],
    )
    const = lambda i: (0, 0)  # params stay VMEM-resident across grid steps

    return pl.pallas_call(
        kernel,
        out_shape=jax.ShapeDtypeStruct((B, n_actions), jnp.float32),
        grid_spec=pltpu.PrefetchScalarGridSpec(
            num_scalar_prefetch=0,
            grid=grid,
            in_specs=[
                pl.BlockSpec((tb, in_dims), lambda i: (i, 0)),  # f32 state tile
                pl.BlockSpec(wblob.shape, const),               # packed bf16 weights
                pl.BlockSpec(bblob.shape, const),               # packed f32 biases
            ],
            out_specs=pl.BlockSpec((tb, n_actions), lambda i: (i, 0)),
        ),
        compiler_params=pltpu.CompilerParams(
            # TODO(synk): on v7x, verify plain "parallel" actually shards batch tiles
            # across both TensorCores; if not, switch to pl.core_map / CORE_PARALLEL.
            dimension_semantics=("parallel",),
            vmem_limit_bytes=vmem_limit,
        ),
    )(state, wblob, bblob)


def init_params(key, input_dims, fc1_dims, fc2_dims, n_actions):
    """Deterministic synthetic parameters (PyTorch-style uniform fan-in init),
    stored pre-transposed as (in_features, out_features)."""
    ks = jax.random.split(key, 6)

    def linear(kw, kb, fan_in, fan_out):
        bound = 1.0 / jnp.sqrt(jnp.float32(fan_in))
        w = jax.random.uniform(kw, (fan_in, fan_out), jnp.float32, -bound, bound)
        b = jax.random.uniform(kb, (1, fan_out), jnp.float32, -bound, bound)
        return w, b

    w1, b1 = linear(ks[0], ks[1], input_dims, fc1_dims)
    w2, b2 = linear(ks[2], ks[3], fc1_dims, fc2_dims)
    w3, b3 = linear(ks[4], ks[5], fc2_dims, n_actions)
    return {"w1": w1, "b1": b1, "w2": w2, "b2": b2, "w3": w3, "b3": b3}


def _ref(x, p):
    """Pure-JAX reference with the same bf16-operand / f32-accumulate math."""
    xb = x.astype(jnp.bfloat16)
    w1 = p["w1"].astype(jnp.bfloat16)
    w2 = p["w2"].astype(jnp.bfloat16)
    w3 = p["w3"].astype(jnp.bfloat16)
    h1 = jnp.maximum(
        jnp.dot(xb, w1, preferred_element_type=jnp.float32) + p["b1"], 0.0
    ).astype(jnp.bfloat16)
    h2 = jnp.maximum(
        jnp.dot(h1, w2, preferred_element_type=jnp.float32) + p["b2"], 0.0
    ).astype(jnp.bfloat16)
    return jnp.dot(h2, w3, preferred_element_type=jnp.float32) + p["b3"]


if __name__ == "__main__":
    # Shapes consistent with DeepQNetwork(lr, input_dims=(16,), fc1=64, fc2=32, n_actions=4)
    input_dims, fc1_dims, fc2_dims, n_actions = 16, 64, 32, 4

    key = jax.random.PRNGKey(0)
    k_state, k_params, k_big = jax.random.split(key, 3)
    params = init_params(k_params, input_dims, fc1_dims, fc2_dims, n_actions)
    packed = pack_params(params)  # one-time: bf16 cast + 7 -> 3 operand collapse

    # Small latency-style batch (single grid step, 3-operand low-overhead path).
    batch = 8
    state = jax.random.normal(k_state, (batch, input_dims), jnp.float32)
    actions = jax.block_until_ready(deep_q_network(state, packed))
    assert actions.shape == (batch, n_actions)
    assert jnp.allclose(actions, _ref(state, params), atol=1e-2, rtol=1e-2)

    # Larger batch: (a) default tile -> single block, no padding/copy at all;
    # (b) small tile -> multi-step grid with a ragged (masked) last block, no jnp.pad.
    big_batch = 1000
    big_state = jax.random.normal(k_big, (big_batch, input_dims), jnp.float32)
    ref_big = _ref(big_state, params)

    big_single = jax.block_until_ready(deep_q_network(big_state, packed))
    assert big_single.shape == (big_batch, n_actions)
    assert jnp.allclose(big_single, ref_big, atol=1e-2, rtol=1e-2)

    big_ragged = jax.block_until_ready(deep_q_network(big_state, packed, tile_b=256))
    assert big_ragged.shape == (big_batch, n_actions)
    assert jnp.allclose(big_ragged, ref_big, atol=1e-2, rtol=1e-2)

    print("KERNEL_OK")
</pallas_src>

<mosaic_0001>
module attributes {stable_mosaic.version = 11 : i64} {
  func.func @_dqn_kernel(%arg0: i32, %arg1: memref<8x16xf32, #tpu.memory_space<vmem>>, %arg2: memref<112x64xbf16, #tpu.memory_space<vmem>>, %arg3: memref<3x64xf32, #tpu.memory_space<vmem>>, %arg4: memref<8x4xf32, #tpu.memory_space<vmem>>) attributes {dimension_semantics = [#tpu.dimension_semantics<parallel>], iteration_bounds = array<i64: 1>, scalar_prefetch = 0 : i64, scratch_operands = 0 : i64, tpu.core_type = #tpu.core_type<tc>, window_params = [{transform_indices = @transform_0, window_bounds = array<i64: 8, 16>}, {pipeline_mode = #tpu.pipeline_mode<synchronous>, transform_indices = @transform_1, window_bounds = array<i64: 112, 64>}, {pipeline_mode = #tpu.pipeline_mode<synchronous>, transform_indices = @transform_2, window_bounds = array<i64: 3, 64>}, {transform_indices = @transform_3, window_bounds = array<i64: 8, 4>}]} {
    %c0 = arith.constant 0 : index
    %c0_0 = arith.constant 0 : index
    %0 = vector.load %arg1[%c0, %c0_0] : memref<8x16xf32, #tpu.memory_space<vmem>>, vector<8x16xf32>
    %1 = arith.truncf %0 : vector<8x16xf32> to vector<8x16xbf16>
    %c0_1 = arith.constant 0 : index
    %c0_2 = arith.constant 0 : index
    %2 = vector.load %arg2[%c0_1, %c0_2] : memref<112x64xbf16, #tpu.memory_space<vmem>>, vector<16x64xbf16>
    %c16 = arith.constant 16 : index
    %c0_3 = arith.constant 0 : index
    %3 = vector.load %arg2[%c16, %c0_3] : memref<112x64xbf16, #tpu.memory_space<vmem>>, vector<64x32xbf16>
    %c80 = arith.constant 80 : index
    %c0_4 = arith.constant 0 : index
    %4 = vector.load %arg2[%c80, %c0_4] : memref<112x64xbf16, #tpu.memory_space<vmem>>, vector<32x4xbf16>
    %c0_5 = arith.constant 0 : index
    %c0_6 = arith.constant 0 : index
    %5 = vector.load %arg3[%c0_5, %c0_6] : memref<3x64xf32, #tpu.memory_space<vmem>>, vector<1x64xf32>
    %c1 = arith.constant 1 : index
    %c0_7 = arith.constant 0 : index
    %6 = vector.load %arg3[%c1, %c0_7] : memref<3x64xf32, #tpu.memory_space<vmem>>, vector<1x32xf32>
    %c2 = arith.constant 2 : index
    %c0_8 = arith.constant 0 : index
    %7 = vector.load %arg3[%c2, %c0_8] : memref<3x64xf32, #tpu.memory_space<vmem>>, vector<1x4xf32>
    %cst = arith.constant dense<0.000000e+00> : vector<8x64xf32>
    %8 = tpu.matmul %1, %2, %cst {dimension_numbers = #tpu.dot_dimension_numbers<[1], [0], [0], [1], [0, 0, 1, 1], [], []>} : vector<8x16xbf16>, vector<16x64xbf16>, vector<8x64xf32> -> vector<8x64xf32>
    %9 = vector.broadcast %5 : vector<1x64xf32> to vector<8x64xf32>
    %10 = arith.addf %8, %9 : vector<8x64xf32>
    %cst_9 = arith.constant 0.000000e+00 : f32
    %11 = vector.broadcast %cst_9 : f32 to vector<8x64xf32>
    %12 = arith.maximumf %10, %11 : vector<8x64xf32>
    %13 = arith.truncf %12 : vector<8x64xf32> to vector<8x64xbf16>
    %cst_10 = arith.constant dense<0.000000e+00> : vector<8x32xf32>
    %14 = tpu.matmul %13, %3, %cst_10 {dimension_numbers = #tpu.dot_dimension_numbers<[1], [0], [0], [1], [0, 0, 1, 1], [], []>} : vector<8x64xbf16>, vector<64x32xbf16>, vector<8x32xf32> -> vector<8x32xf32>
    %15 = vector.broadcast %6 : vector<1x32xf32> to vector<8x32xf32>
    %16 = arith.addf %14, %15 : vector<8x32xf32>
    %cst_11 = arith.constant 0.000000e+00 : f32
    %17 = vector.broadcast %cst_11 : f32 to vector<8x32xf32>
    %18 = arith.maximumf %16, %17 : vector<8x32xf32>
    %19 = arith.truncf %18 : vector<8x32xf32> to vector<8x32xbf16>
    %cst_12 = arith.constant dense<0.000000e+00> : vector<8x4xf32>
    %20 = tpu.matmul %19, %4, %cst_12 {dimension_numbers = #tpu.dot_dimension_numbers<[1], [0], [0], [1], [0, 0, 1, 1], [], []>} : vector<8x32xbf16>, vector<32x4xbf16>, vector<8x4xf32> -> vector<8x4xf32>
    %21 = vector.broadcast %7 : vector<1x4xf32> to vector<8x4xf32>
    %22 = arith.addf %20, %21 : vector<8x4xf32>
    %c0_13 = arith.constant 0 : index
    %c0_14 = arith.constant 0 : index
    %23 = vector.load %arg4[%c0_13, %c0_14] : memref<8x4xf32, #tpu.memory_space<vmem>>, vector<8x4xf32>
    tpu.vector_store %arg4[%c0_13, %c0_14], %22 {strides = array<i32>} : memref<8x4xf32, #tpu.memory_space<vmem>>, vector<8x4xf32>,
    return
  }
  func.func @transform_0(%arg0: i32) -> (i32, i32) {
    %c0_i32 = arith.constant 0 : i32
    %c0_i32_0 = arith.constant 0 : i32
    return %arg0, %c0_i32 : i32, i32
  }
  func.func @transform_1(%arg0: i32) -> (i32, i32) {
    %c0_i32 = arith.constant 0 : i32
    %c0_i32_0 = arith.constant 0 : i32
    %c0_i32_1 = arith.constant 0 : i32
    return %c0_i32, %c0_i32_0 : i32, i32
  }
  func.func @transform_2(%arg0: i32) -> (i32, i32) {
    %c0_i32 = arith.constant 0 : i32
    %c0_i32_0 = arith.constant 0 : i32
    %c0_i32_1 = arith.constant 0 : i32
    return %c0_i32, %c0_i32_0 : i32, i32
  }
  func.func @transform_3(%arg0: i32) -> (i32, i32) {
    %c0_i32 = arith.constant 0 : i32
    %c0_i32_0 = arith.constant 0 : i32
    return %arg0, %c0_i32 : i32, i32
  }
}

</mosaic_0001>

<bundles_post_ra>
// kernel: tpu_custom_call.1
= control target key start
LH: loop header
LB: loop body
LE: loop exit
PB: predicated region body
PF: predicated region fallthrough
CT: control target
= control target key end

     0   :  { %v288_v0 = vmov 0.0   ;;  %vm289_vm0 = vmmov 0   ;;  %vm44_vm1 = vcmask 130048   ;;  %vm118_vm2 = vcmask 523264   ;;  %s346_s1 = inlined_call_operand.vmem [shape: bf16[112,64], index: 1, kind: input, shape index: {}]   ;;  %s347_s0 = inlined_call_operand.vmem [shape: f32[8,16], index: 0, kind: input, shape index: {}]   ;;  %s348_s2 = inlined_call_operand.vmem [shape: f32[3,64], index: 2, kind: input, shape index: {}]   ;;  %s349_s3 = inlined_call_operand.vmem [shape: f32[8,4], index: 3, kind: output, shape index: {}]  }
   0x1   :  { %253 = vmatprep.subr.bf16.mxu0 %v288_v0  ;;  %v281_v1 = vld [vmem:[%s346_s1] sm:$0xff]   ;;  %255 = vmatprep.mubr.msk.bf16.mxu0 %vm289_vm0, %v288_v0  ;;  %v282_v4 = vld [vmem:[%s346_s1 + $0x8] sm:$0xff]   ;;  %v283_v5 = vld [vmem:[%s346_s1 + $0x10] sm:$0xff]   ;;  %vm180_vm3 = vcmask 261120   ;;  %vm224_vm4 = vcmask 31744  }
   0x2   :  { %v15_v2 = vld [vmem:[%s347_s0] sm:$0xff]  ;;  %259 = vmatprep.subr.bf16.mxu1 %v288_v0  ;;  %267 = vmatprep.mubr.msk.bf16.mxu1 %vm289_vm0, %v288_v0  ;;  %v284_v6 = vld [vmem:[%s346_s1 + $0x18] sm:$0xff]   ;;  %v286_v8 = vld [vmem:[%s346_s1 + $0x28] sm:$0xff]  }
   0x3   :  { %254 = vmatpush3.bf16.msra.mxu0 %v281_v1  ;;  %v16_v3 = vpack.c.bf16 %v15_v2, %v15_v2  ;;  %260 = vmatpush3.bf16.msra.mxu1 %v282_v4  ;;  %v285_v7 = vld [vmem:[%s346_s1 + $0x20] sm:$0xff]   ;;  %v287_v17 = vld [vmem:[%s346_s1 + $0x30] sm:$0xff]  }
   0x4   :  { %271 = vmatprep.subr.bf16.mxu0 %v288_v0  ;;  %261 = vmatprep.subr.bf16.mxu1 %v288_v0  ;;  %v230_v9 = vld [vmem:[%s348_s2] ss:$0 sm:$0xff]  ;;  %v233_v18 = vld [vmem:[%s348_s2 + $0x1] ss:$0 sm:$0xff]  ;;  %v239_v26 = vld [vmem:[%s348_s2 + $0x2] ss:$0 sm:$0xff] }
   0x6   :  { %256 = vmatmul.mubr.msk.bf16.vlgmr.msra.gmra.mrb[0].mxu0 %vm44_vm1, %v16_v3 }
   0x7   :  { %275 = vmatprep.mubr.msk.bf16.mxu0 %vm289_vm0, %v288_v0  ;;  %262 = vmatpush3.bf16.msra.mxu1 %v283_v5 }
   0x8   :  { %263 = vmatprep.subr.bf16.mxu1 %v288_v0  ;;  %272 = vmatpush3.bf16.msra.mxu0 %v286_v8 }
   0x9   :  { %273 = vmatprep.subr.bf16.mxu0 %v288_v0 }
   0xb   :  { %264 = vmatpush3.bf16.msra.mxu1 %v284_v6 }
   0xc   :  { %265 = vmatprep.subr.bf16.mxu1 %v288_v0  ;;  %274 = vmatpush3.bf16.msra.mxu0 %v287_v17 }
   0xf   :  { %266 = vmatpush3.bf16.msra.mxu1 %v285_v7 }
  0xd9   :  { %v82_v10 = vpop.f32.mrb[0].mxu0 }
  0xda   :  { %v83_v11 = vadd.f32 %v230_v9, %v82_v10  ;;  %v257_v12 = vpop.f32.mrb[1].mxu0 }
  0xdb   :  { %v85_v13 = vpop.f32.mrb[2].mxu0 }
  0xdc   :  { %v88_v14 = vmax.f32 %v83_v11, 0.0  ;;  %v258_v15 = vpop.f32.mrb[3].mxu0 }
  0xde   :  { %v89_v16 = vpack.c.bf16 %v88_v14, %v88_v14 }
  0xe0   :  { %268 = vmatmul.mubr.msk.bf16.vlgmr.msra.gmra.mrb[0].mxu1 %vm118_vm2, %v89_v16 }
 0x1b3   :  { %v156_v19 = vpop.f32.mrb[0].mxu1 }
 0x1b4   :  { %v157_v20 = vadd.f32 %v233_v18, %v156_v19  ;;  %v269_v21 = vpop.f32.mrb[1].mxu1 }
 0x1b5   :  { %v159_v22 = vpop.f32.mrb[2].mxu1 }
 0x1b6   :  { %v162_v23 = vmax.f32 %v157_v20, 0.0  ;;  %v270_v24 = vpop.f32.mrb[3].mxu1 }
 0x1b8   :  { %v163_v25 = vpack.c.bf16 %v162_v23, %v162_v23 }
 0x1ba   :  { %276 = vmatmul.mubr.msk.bf16.vlgmr.msra.gmra.mrb[4].mxu0 %vm180_vm3, %v163_v25 }
 0x28d   :  { %v218_v27 = vpop.f32.mrb[4].mxu0 }
 0x28e   :  { %v219_v28 = vadd.f32 %v239_v26, %v218_v27  ;;  %v277_v29 = vpop.f32.mrb[5].mxu0 }
 0x28f   :  { %v221_v30 = vpop.f32.mrb[6].mxu0 }
 0x290   :  { %225 = vst.msk [vmem:[%s349_s3] sm:$0xff] %vm224_vm4, %v219_v28  ;;  %v278_v31 = vpop.f32.mrb[7].mxu0 }

</bundles_post_ra>
